<compile_context>
chip_gen: v7x
topology: tpu7x:2x2x1
jax: 0.10.0
libtpu: 0.0.40
codegen_flags: <defaults>
</compile_context>

<pallas_src>
import functools

import jax
import jax.numpy as jnp
from jax.experimental import pallas as pl
from jax.experimental.pallas import tpu as pltpu

EPS = 1e-6


def _phasenet_loss_kernel(w_ref, pred_ref, tgt_ref, out_ref, *, inv_n):
    """One (channel, row-tile) grid step.

    w_ref    : SMEM (C,) f32 scalar-prefetch channel weights.
    pred_ref : VMEM (tile_rows, lanes) predictions for channel c.
    tgt_ref  : VMEM (tile_rows, lanes) targets for channel c.
    out_ref  : SMEM (1, 1) f32 resident accumulator (the final loss).
    """
    c = pl.program_id(0)
    r = pl.program_id(1)

    @pl.when(jnp.logical_and(c == 0, r == 0))
    def _init():
        out_ref[0, 0] = jnp.float32(0.0)

    p = pred_ref[...]
    t = tgt_ref[...]
    # Upcast only if the inputs were shipped in a narrow dtype (e.g. bf16);
    # no-op astype is skipped at trace time for f32 inputs.
    if p.dtype != jnp.float32:
        p = p.astype(jnp.float32)
    if t.dtype != jnp.float32:
        t = t.astype(jnp.float32)

    p = jnp.clip(p, EPS, 1.0 - EPS)
    bce = -(t * jnp.log(p) + (1.0 - t) * jnp.log(1.0 - p))

    # Single full reduction per tile; weight * (tile_sum / (B*T)) accumulated
    # into the scalar output.  1/(B*T) is a compile-time constant multiply.
    tile_sum = jnp.sum(bce)
    out_ref[0, 0] += w_ref[c] * (tile_sum * inv_n)


def _pick_tile_rows(n_rows, max_rows=1024):
    """Largest row-tile <= max_rows that keeps blocks legal and exact.

    If the whole row dim fits, use it (block == full dim is always legal).
    Otherwise pick a divisor of n_rows that is a multiple of 8 (sublane
    granularity) so no partial/padded blocks ever enter the reduction.
    """
    if n_rows <= max_rows:
        return n_rows
    start = max_rows - (max_rows % 8)
    for t in range(start, 7, -8):
        if n_rows % t == 0:
            return t
    # No aligned divisor found: fall back to a single full-extent block.
    return n_rows


def phasenet_loss(pred, tgt, weights=None):
    """Pallas implementation of PhaseNetLoss.forward.

    pred, tgt : (B, C, T) arrays (float32 or bfloat16), pred values in [0, 1].
    weights   : (C,) per-channel weights; defaults to [0.1, 1.0] like the module.
    Returns a scalar float32 loss.
    """
    B, C, T = pred.shape
    assert tgt.shape == pred.shape
    if weights is None:
        weights = jnp.array([0.1, 1.0], dtype=jnp.float32)
    weights = jnp.asarray(weights, dtype=jnp.float32)
    assert weights.shape == (C,), "one weight per channel required"

    n = B * T
    inv_n = 1.0 / float(n)  # compile-time constant; no divide in the kernel

    # Channel-major, lane-dense layout: each channel becomes a dense
    # (rows, lanes) slab with lanes == 128 whenever possible, so VMEM tiles
    # carry no sublane padding from the tiny channel dim.
    xp = jnp.transpose(pred, (1, 0, 2)).reshape(C, n)
    xt = jnp.transpose(tgt, (1, 0, 2)).reshape(C, n)
    if n % 128 == 0:
        lanes = 128
        rows = n // 128
    else:
        lanes = T  # fallback: T on lanes, B on sublanes
        rows = B
    xp = xp.reshape(C, rows, lanes)
    xt = xt.reshape(C, rows, lanes)

    tile_rows = _pick_tile_rows(rows)
    grid = (C, rows // tile_rows)

    # index_map args: (channel, row_tile, weights_smem_ref)
    data_spec = pl.BlockSpec(
        (pl.Squeezed(), tile_rows, lanes), lambda c, r, w: (c, r, 0)
    )

    out = pl.pallas_call(
        functools.partial(_phasenet_loss_kernel, inv_n=inv_n),
        out_shape=jax.ShapeDtypeStruct((1, 1), jnp.float32),
        grid_spec=pltpu.PrefetchScalarGridSpec(
            num_scalar_prefetch=1,
            grid=grid,
            in_specs=[data_spec, data_spec],
            out_specs=pl.BlockSpec(memory_space=pltpu.MemorySpace.SMEM),
        ),
        compiler_params=pltpu.CompilerParams(
            # Both grid axes feed one shared scalar accumulator -> reductions.
            dimension_semantics=("arbitrary", "arbitrary"),
        ),
    )(weights, xp, xt)
    return out[0, 0]


def _reference_loss(pred, tgt, weights):
    """Pure-JAX reference mirroring the PyTorch forward exactly."""
    loss = jnp.float32(0.0)
    for c in range(pred.shape[1]):
        p = jnp.clip(pred[:, c].astype(jnp.float32), EPS, 1.0 - EPS)
        t = tgt[:, c].astype(jnp.float32)
        bce = -(t * jnp.log(p) + (1.0 - t) * jnp.log(1.0 - p))
        loss = loss + weights[c] * jnp.mean(bce)
    return loss


if __name__ == "__main__":
    key = jax.random.PRNGKey(0)

    # Case 1: shapes matching the module defaults (2 channels, weights [0.1, 1]).
    B, C, T = 2, 2, 128
    k1, k2, key = jax.random.split(key, 3)
    pred = jax.nn.sigmoid(jax.random.normal(k1, (B, C, T), dtype=jnp.float32))
    tgt = jax.random.uniform(k2, (B, C, T), dtype=jnp.float32)
    weights = jnp.array([0.1, 1.0], dtype=jnp.float32)

    loss = jax.block_until_ready(phasenet_loss(pred, tgt, weights))
    ref = jax.block_until_ready(_reference_loss(pred, tgt, weights))
    assert jnp.allclose(loss, ref, rtol=1e-5, atol=1e-6), (loss, ref)

    # Case 2: slightly larger config exercising C != 2 and the multi-row
    # lane-dense path (still tiny).
    B2, C2, T2 = 4, 3, 256
    k3, k4, _ = jax.random.split(key, 3)
    pred2 = jax.nn.sigmoid(jax.random.normal(k3, (B2, C2, T2), dtype=jnp.float32))
    tgt2 = jax.random.uniform(k4, (B2, C2, T2), dtype=jnp.float32)
    w2 = jnp.array([0.3, 0.5, 1.0], dtype=jnp.float32)

    loss2 = jax.block_until_ready(phasenet_loss(pred2, tgt2, w2))
    ref2 = jax.block_until_ready(_reference_loss(pred2, tgt2, w2))
    assert jnp.allclose(loss2, ref2, rtol=1e-5, atol=1e-6), (loss2, ref2)

    print("KERNEL_OK")
</pallas_src>

<mosaic_0001>
module attributes {stable_mosaic.version = 11 : i64} {
  func.func @_phasenet_loss_kernel(%arg0: i32, %arg1: i32, %arg2: memref<2xf32, #tpu.memory_space<smem>>, %arg3: memref<1x2x128xf32, #tpu.memory_space<vmem>>, %arg4: memref<1x2x128xf32, #tpu.memory_space<vmem>>, %arg5: memref<1x1xf32, #tpu.memory_space<smem>>) attributes {dimension_semantics = [#tpu.dimension_semantics<arbitrary>, #tpu.dimension_semantics<arbitrary>], iteration_bounds = array<i64: 2, 1>, scalar_prefetch = 1 : i64, scratch_operands = 0 : i64, tpu.core_type = #tpu.core_type<tc>, window_params = [{transform_indices = @transform_0, window_bounds = array<i64: 1, 2, 128>}, {transform_indices = @transform_1, window_bounds = array<i64: 1, 2, 128>}, {transform_indices = @transform_2, window_bounds = array<i64: 1, 1>}]} {
    %c0_i32 = arith.constant 0 : i32
    %0 = arith.cmpi eq, %arg0, %c0_i32 : i32
    %c0_i32_0 = arith.constant 0 : i32
    %1 = arith.cmpi eq, %arg1, %c0_i32_0 : i32
    %2 = arith.andi %0, %1 : i1
    %3 = arith.extui %2 : i1 to i32
    %c0_i32_1 = arith.constant 0 : i32
    %4 = arith.cmpi ne, %3, %c0_i32_1 : i32
    scf.if %4 {
      %cst_17 = arith.constant 0.000000e+00 : f32
      %c0_18 = arith.constant 0 : index
      %c0_19 = arith.constant 0 : index
      %35 = memref.load %arg5[%c0_18, %c0_19] : memref<1x1xf32, #tpu.memory_space<smem>>
      memref.store %cst_17, %arg5[%c0_18, %c0_19] : memref<1x1xf32, #tpu.memory_space<smem>>
    } else {
    }
    %c0 = arith.constant 0 : index
    %c0_2 = arith.constant 0 : index
    %c0_3 = arith.constant 0 : index
    %5 = vector.load %arg3[%c0, %c0_2, %c0_3] : memref<1x2x128xf32, #tpu.memory_space<vmem>>, vector<1x2x128xf32>
    %6 = vector.shape_cast %5 : vector<1x2x128xf32> to vector<2x128xf32>
    %c0_4 = arith.constant 0 : index
    %c0_5 = arith.constant 0 : index
    %c0_6 = arith.constant 0 : index
    %7 = vector.load %arg4[%c0_4, %c0_5, %c0_6] : memref<1x2x128xf32, #tpu.memory_space<vmem>>, vector<1x2x128xf32>
    %8 = vector.shape_cast %7 : vector<1x2x128xf32> to vector<2x128xf32>
    %cst = arith.constant 9.99999997E-7 : f32
    %cst_7 = arith.constant 0.999998986 : f32
    %9 = vector.broadcast %cst : f32 to vector<2x128xf32>
    %10 = arith.maximumf %9, %6 : vector<2x128xf32>
    %11 = vector.broadcast %cst_7 : f32 to vector<2x128xf32>
    %12 = arith.minimumf %11, %10 : vector<2x128xf32>
    %13 = math.log %12 : vector<2x128xf32>
    %14 = arith.mulf %8, %13 : vector<2x128xf32>
    %cst_8 = arith.constant 1.000000e+00 : f32
    %15 = vector.broadcast %cst_8 : f32 to vector<2x128xf32>
    %16 = arith.subf %15, %8 : vector<2x128xf32>
    %cst_9 = arith.constant 1.000000e+00 : f32
    %17 = vector.broadcast %cst_9 : f32 to vector<2x128xf32>
    %18 = arith.subf %17, %12 : vector<2x128xf32>
    %19 = math.log %18 : vector<2x128xf32>
    %20 = arith.mulf %16, %19 : vector<2x128xf32>
    %21 = arith.addf %14, %20 : vector<2x128xf32>
    %cst_10 = arith.constant 0.000000e+00 : f32
    %22 = vector.broadcast %cst_10 : f32 to vector<2x128xf32>
    %23 = arith.subf %22, %21 : vector<2x128xf32>
    %24 = vector.shape_cast %23 : vector<2x128xf32> to vector<1x2x128xf32>
    %cst_11 = arith.constant dense<0.000000e+00> : vector<1xf32>
    %25 = vector.multi_reduction <add>, %24, %cst_11 [1, 2] : vector<1x2x128xf32> to vector<1xf32>
    %26 = vector.shape_cast %25 : vector<1xf32> to vector<1x1x1xf32>
    %27 = vector.extract %26[0, 0, 0] : f32 from vector<1x1x1xf32>
    %c0_12 = arith.constant 0 : index
    %c0_13 = arith.constant 0 : index
    %28 = memref.load %arg5[%c0_12, %c0_13] : memref<1x1xf32, #tpu.memory_space<smem>>
    %29 = arith.index_cast %arg0 : i32 to index
    %30 = memref.load %arg2[%29] : memref<2xf32, #tpu.memory_space<smem>>
    %cst_14 = arith.constant 3.906250e-03 : f32
    %31 = arith.mulf %27, %cst_14 : f32
    %32 = arith.mulf %30, %31 : f32
    %33 = arith.addf %28, %32 : f32
    %c0_15 = arith.constant 0 : index
    %c0_16 = arith.constant 0 : index
    %34 = memref.load %arg5[%c0_15, %c0_16] : memref<1x1xf32, #tpu.memory_space<smem>>
    memref.store %33, %arg5[%c0_15, %c0_16] : memref<1x1xf32, #tpu.memory_space<smem>>
    return
  }
  func.func @transform_0(%arg0: i32, %arg1: i32, %arg2: memref<2xf32, #tpu.memory_space<smem>>) -> (i32, i32, i32) {
    %c0_i32 = arith.constant 0 : i32
    %c0_i32_0 = arith.constant 0 : i32
    return %arg0, %arg1, %c0_i32 : i32, i32, i32
  }
  func.func @transform_1(%arg0: i32, %arg1: i32, %arg2: memref<2xf32, #tpu.memory_space<smem>>) -> (i32, i32, i32) {
    %c0_i32 = arith.constant 0 : i32
    %c0_i32_0 = arith.constant 0 : i32
    return %arg0, %arg1, %c0_i32 : i32, i32, i32
  }
  func.func @transform_2(%arg0: i32, %arg1: i32, %arg2: memref<2xf32, #tpu.memory_space<smem>>) -> (i32, i32) {
    %c0_i32 = arith.constant 0 : i32
    %c0_i32_0 = arith.constant 0 : i32
    %c0_i32_1 = arith.constant 0 : i32
    return %c0_i32, %c0_i32_0 : i32, i32
  }
}

</mosaic_0001>

<bundles_post_ra>
// kernel: tpu_custom_call.1
= control target key start
LH: loop header
LB: loop body
LE: loop exit
PB: predicated region body
PF: predicated region fallthrough
CT: control target
= control target key end

     0   :  { %s690_s0 = inlined_call_operand.hbm [shape: f32[2], index: 0, kind: input, shape index: {}]   ;;  %s691_s1 = inlined_call_operand.hbm [shape: f32[2,2,128], index: 1, kind: input, shape index: {}]   ;;  %s692_s2 = inlined_call_operand.vmem [shape: f32[2,2,128], index: 2, kind: input, shape index: {}]   ;;  %s693_s3 = inlined_call_operand.hbm [shape: f32[1,1], index: 3, kind: output, shape index: {}]  }
   0x1   :  { %s401_s14 = scalar_lea.hbm %s690_s0, 16 }
   0x2   :  { %p402_p0 = scmp.ne.s32.totalorder %s690_s0, %s401_s14  ;;  %p405_p1 = scmp.lt.u32.totalorder %s401_s14, %s690_s0 }
   0x4   :  { %p407_p2 = pnand %p405_p1, %p402_p0 }
   0x6   :  { %410 = shalt.err (!%p407_p2)  }
   0x7   :  { %s511_s19 = smov [#allocation3]  }
   0x8   :  { %9 = dma.hbm_to_smem %s690_s0, 16, %s511_s19, [#allocation2] }
   0x9   :  { %477 = dma.done.wait [#allocation2], 16 }
   0xa   :  { %478 = vsyncadd [#allocation2], 4294967280 }
   0xb   :  { %11 = sfence }
   0xc   :  { %12 = vsyncpa [#allocation5], 0 }
   0xd   :  { %14 = vsyncpa [#allocation5 + $0x1], 0 }
   0xe   :  { %15 = vsyncpa [#allocation6], 0  ;;  %s547_s22 = smov 0   ;;  %s549_s23 = smov 0  }
   0xf   :  { %s551_s24 = smov 0   ;;  %s553_s25 = smov 0  }
  0x10   :  { %s555_s26 = smov 0   ;;  %s557_s27 = smov 0  }
  0x11 LB: > { %s316_s0 = sadd.s32 4294967295, %s509_s27   ;;  %s33_s28 = sadd.s32 1, %s505_s26  ;;  %s509_s27 = sphi %s557_s27, %s21_s27   ;;  %s505_s26 = sphi %s555_s26, %s703_s26   ;;  %s501_s25 = sphi %s553_s25, %s702_s25   ;;  %s497_s24 = sphi %s551_s24, %s701_s24   ;;  %s493_s23 = sphi %s549_s23, %s700_s23   ;;  %s489_s22 = sphi %s547_s22, %s699_s22  }
  0x12   : > { %p35_p3 = scmp.ge.s32.totalorder %s33_s28, 2  ;;  %s42_s29 = sadd.s32 1, %s497_s24 }
  0x13   : > { %p49_p4 = scmp.ne.s32.totalorder %s497_s24, %s493_s23  ;;  %p50_p5 = scmp.eq.s32.totalorder %s509_s27, 0 }
  0x14   : > { %s705_s28 = smov (%p35_p3, %s33_s28), 0  ;;  %p55_p7 = scmp.ne.s32.totalorder %s493_s23, %s489_s22 }
  0x15   : > { %p583_p6 = por %p50_p5, %p49_p4  ;;  %s37_s4 = ssub.s32 %s505_s26, %s705_s28 }
  0x16   : > { %p56_p8 = scmp.eq.s32.totalorder %s316_s0, 0  ;;  %p40_p9 = scmp.eq.s32.totalorder %s37_s4, 0 }
  0x17   : > { %p343_p11 = scmp.lt.s32.totalorder %s509_s27, 2  ;;  %s128_s7 = sand.u32 1, %s497_s24  }
  0x18   : > { %p592_p10 = por %p56_p8, %p55_p7  ;;  %s320_s8 = sshll.u32 %s505_s26, 5 }
  0x19   : > { %s598_s6 = scalar_select %p40_p9, %s497_s24, %s42_s29  }
  0x1a   : > { %s319_s9 = sshll.u32 %s128_s7, 1  ;;  %s605_s12 = scalar_lea.hbm %s691_s1, %s320_s8 }
  0x1b   : > { %s132_s13 = scalar_lea.vmem [#allocation4], %s319_s9  ;;  %p609_p12 = pnand %p343_p11, %p583_p6 }
  0x1c   : > { %s140_s14 = sshll.u32 %s132_s13, 4  ;;  %s129_s16 = scalar_lea.sflag [#allocation5], %s128_s7  ;;  %s613_s14 = int_to_ptr.vmem [resolvable:$true] %s140_s14 }
  0x1d   : > { %s411_s17 = scalar_lea.hbm %s605_s12, 32  ;;  %p413_p2 = pneg %p609_p12 }
  0x1e   : > { %p412_p1 = scmp.ne.s32.totalorder %s605_s12, %s411_s17  ;;  %s416_s20 = scalar_lea.hbm %s691_s1, 64 }
  0x1f   : > { %p417_p5 = scmp.lt.u32.totalorder %s605_s12, %s691_s1  ;;  %p418_p6 = scmp.lt.u32.totalorder %s416_s20, %s411_s17 }
  0x20   : > { %p414_p3 = pnand %p413_p2, %p412_p1  ;;  %p420_p8 = scmp.lt.u32.totalorder %s411_s17, %s605_s12 }
  0x21   : > { %p419_p7 = por %p418_p6, %p417_p5 }
  0x22   : > { %p415_p4 = pneg %p414_p3 }
  0x23   : > { %p421_p9 = por %p420_p8, %p419_p7 }
  0x25   : > { %p422_p11 = pnand %p421_p9, %p415_p4 }
  0x27   : > { %425 = shalt.err (!%p422_p11)
}
  0x28   : > { %s426_s29 = scalar_lea.vmem %s613_s14, 32  ;;  %s512_s30 = smov [#allocation4]  }
  0x29   : > { %p427_p1 = scmp.ne.s32.totalorder %s613_s14, %s426_s29  ;;  %s431_s4 = sshll.u32 %s512_s30, 4  ;;  %s432_s4 = int_to_ptr.vmem [resolvable:$false] %s431_s4 }
  0x2a   : > { %s433_s7 = scalar_lea.vmem %s432_s4, 64  ;;  %p434_p0 = scmp.lt.s32.totalorder %s613_s14, %s432_s4 }
  0x2b   : > { %p429_p3 = pnand %p427_p1, %p413_p2  ;;  %p435_p5 = scmp.lt.s32.totalorder %s433_s7, %s426_s29 }
  0x2d   : > { %p430_p13 = pneg %p429_p3  ;;  %p436_p6 = por %p435_p5, %p434_p0 }
  0x2f   : > { %p437_p7 = pnand %p436_p6, %p430_p13 }
  0x31   : > { %440 = shalt.err (!%p437_p7)
}
  0x32   : > { %342 = dma.hbm_to_vmem [thread:$0]  (!%p609_p12), %s605_s12, 32, %s613_s14, %s129_s16  }
  0x33   : > { %p697_p4 = scmp.lt.s32.totalorder %s509_s27, 3  ;;  %p698_p8 = scmp.ge.s32.totalorder %s509_s27, 1 }
  0x35   : > { %p156_p2 = pnand %p698_p8, %p697_p4 }
  0x36   : > { %s161_s8 = sand.u32 (!%p156_p2), 1, %s493_s23  }
  0x37   : > { %159 = sbr.rel (%p156_p2) target bundleno = 307 (0x133), region = 28  ;;  %s322_s9 = sshll.u32 (!%p156_p2), %s161_s8, 1 }
  0x38   : > { %s162_s10 = scalar_lea.sflag (!%p156_p2), [#allocation5], %s161_s8  ;;  %s165_s11 = scalar_lea.vmem (!%p156_p2), [#allocation4], %s322_s9 }
  0x3e   : > { %480 = dma.done.wait (%p592_p10), %s162_s10, 32  }
  0x3f   : > { %482 = vsyncadd (%p592_p10), %s162_s10, 4294967264  ;;  %p188_p13 = scmp.lt.s32.totalorder %s501_s25, 1  ;;  %v203_v0 = vld [vmem:[%s165_s11] sm:$0x3]  ;;  %vm217_vm0 = vcmask 1041408   ;;  %p195_p10 = scmp.eq.s32.totalorder %s501_s25, 0 }
  0x40   : > { %v205_v1 = vmax.f32 %v203_v0, 1e-06  ;;  %s513_s5 = smov 0.0   ;;  %s229_s17 = sld [smem:[#allocation3 + %s501_s25]] }
  0x41   : > { %s189_s12 = scalar_select %p188_p13, %s501_s25, 1 }
  0x42   : > { %v206_v2 = vmin.f32 %v205_v1, 0.999999  ;;  %334 = sst [smem:[#allocation7]] (%p195_p10), %s513_s5  ;;  %p344_p12 = scmp.eq.s32.totalorder %s316_s0, 1 }
  0x43   : > { %s323_s13 = sshll.u32 %s189_s12, 1  ;;  %s228_s18 = sld [smem:[#allocation7]] }
  0x44   : > { %397 = vlog2.f32 %v206_v2  ;;  %v211_v3 = vsub.f32 1.0, %v206_v2  ;;  %s194_s16 = scalar_lea.vmem %s692_s2, %s323_s13  ;;  %s441_s4 = scalar_lea.hbm %s693_s3, 16 }
  0x45   : > { %v204_v4 = vld [vmem:[%s194_s16] sm:$0x3]  ;;  %p442_p0 = scmp.ne.s32.totalorder %s693_s3, %s441_s4  ;;  %p447_p1 = scmp.lt.u32.totalorder %s441_s4, %s693_s3 }
  0x46   : > { %399 = vlog2.f32 %v211_v3  ;;  %v210_v7 = vsub.f32 1.0, %v204_v4 }
  0x47   : > { %p443_p9 = pnand %p442_p0, %p344_p12 }
  0x49   : > { %p444_p11 = pneg %p443_p9 }
  0x4b   : > { %p449_p3 = pnand %p447_p1, %p444_p11 }
  0x4e   : > { %v398_v5 = vpop.eup %397 }
  0x4f   : > { %v208_v6 = vmul.f32 0.6931472, %v398_v5 }
  0x50   : > { %v400_v8 = vpop.eup %399 }
  0x51   : > { %v209_v9 = vmul.f32 %v208_v6, %v204_v4  ;;  %v213_v10 = vmul.f32 0.6931472, %v400_v8 }
  0x53   : > { %v214_v11 = vmul.f32 %v213_v10, %v210_v7 }
  0x55   : > { %v215_v12 = vadd.f32 %v214_v11, %v209_v9 }
  0x57   : > { %v216_v13 = vsub.f32 0.0, %v215_v12 }
  0x59   : > { %v218_v14 = vsel %vm217_vm0, %v216_v13, 0.0 }
  0x5a   : > { %219 = vadd.xlane.f32.xlu0 %v218_v14 }
  0xe7   : > { %v220_v15 = vpop.xlane.xlu0 %219 }
  0xe8   : > { %v221_v16 = vrot.slane %v220_v15, 4 }
  0xea   : > { %v222_v17 = vadd.f32 %v221_v16, %v220_v15 }
  0xec   : > { %v223_v18 = vrot.slane %v222_v17, 2 }
  0xee   : > { %v224_v19 = vadd.f32 %v223_v18, %v222_v17 }
  0xf0   : > { %v225_v20 = vrot.slane %v224_v19, 1 }
  0xf2   : > { %v226_v21 = vadd.f32 %v225_v20, %v224_v19 }
  0xf4   : > { %330 = vpush %v226_v21 }
 0x125   : > { %s331_s19 = spop %330 }
 0x126   : > { %s230_s20 = smul.f32 0.00390625, %s331_s19 }
 0x128   : > { %s231_s21 = smul.f32 %s230_s20, %s229_s17 }
 0x12a   : > { %s232_s22 = sadd.f32 %s231_s21, %s228_s18 }
 0x12c   : > { %234 = sst [smem:[#allocation7]] %s232_s22 }
 0x12d   : > { %452 = shalt.err (!%p449_p3)
}
 0x12e   : > { %s514_s10 = smov [#allocation7]  }
 0x12f   : > { %336 = dma.smem_to_hbm (%p344_p12), %s514_s10, 16, %s693_s3, [#allocation6]  }
 0x130   : > { %484 = dma.done.wait (%p344_p12), [#allocation6], 16  }
 0x131   : > { %486 = vsyncadd (%p344_p12), [#allocation6], 4294967280 }
 0x132   : > { %248 = sfence }
 0x133 PF: > { %s21_s27 = sadd.s32 1, %s509_s27   ;;  %s699_s22 = smov %s493_s23 }
 0x134   : > { %p18_p5 = scmp.ge.s32.totalorder %s21_s27, 4   ;;  %s700_s23 = smov %s497_s24 }
 0x135   : > { %s701_s24 = smov %s598_s6  ;;  %s702_s25 = smov %s505_s26 }
 0x136   : > { %s703_s26 = smov %s705_s28  ;;  %20 = sbr.rel (!%p18_p5) target bundleno = 17 (0x11), region = 74 }
 0x13d   :  { %254 = vsyncpa [#allocation5], 1 }
 0x13e   :  { %256 = vsyncpa [#allocation5 + $0x1], 1 }
 0x13f   :  { %257 = vsyncpa [#allocation6], 1 }
 0x140   :  { %259 = vsyncpa [#allocation6 + $0x1], 1 }

</bundles_post_ra>
